<compile_context>
chip_gen: v7x
topology: tpu7x:2x2x1
jax: 0.10.0
libtpu: 0.0.40
codegen_flags: <defaults>
</compile_context>

<pallas_src>
import functools

import jax
import jax.numpy as jnp
from jax.experimental import pallas as pl
from jax.experimental.pallas import tpu as pltpu

FEAT = 3            # nn.Linear(3, 3)
LANE = 128          # vreg lane width; batch is padded to a multiple of this
MAX_TILE_B = 512    # batch rows per grid step (lane-aligned, VMEM-trivial everywhere)
DROPOUT_P = 0.5


def _round_up(n, m):
    return ((n + m - 1) // m) * m


def _ffn_kernel(x_ref, m_ref, w1_ref, b1_ref, w2_ref, b2_ref, o_ref):
    """Feature-major FFN tile.

    x_ref, m_ref, o_ref : (FEAT, TILE_B) VMEM, batch on the 128-lane axis.
    w1_ref, w2_ref      : (FEAT, FEAT) SMEM, PyTorch [out_features, in_features] layout.
    b1_ref, b2_ref      : (FEAT,) SMEM.
    m_ref is the pre-scaled dropout keep-mask ({0, 1/(1-p)}; all-ones in eval mode).
    """
    # Load the three feature rows of x once; everything below is pure VPU work.
    x = [x_ref[i:i + 1, :] for i in range(FEAT)]          # FEAT x (1, TILE_B)

    # linear1 + dropout: h_j = (sum_i w1[j, i] * x_i + b1[j]) * mask_j
    h = []
    for j in range(FEAT):
        acc = x[0] * w1_ref[j, 0]
        for i in range(1, FEAT):
            acc = acc + x[i] * w1_ref[j, i]
        h.append((acc + b1_ref[j]) * m_ref[j:j + 1, :])

    # linear2: y_j = sum_i w2[j, i] * h_i + b2[j]
    for j in range(FEAT):
        acc = h[0] * w2_ref[j, 0]
        for i in range(1, FEAT):
            acc = acc + h[i] * w2_ref[j, i]
        o_ref[j:j + 1, :] = (acc + b2_ref[j]).astype(o_ref.dtype)


def _dropout_mask(key, shape):
    """Pre-scaled keep mask: 1/(1-p) with prob (1-p), else 0."""
    keep = jax.random.uniform(key, shape, jnp.float32) >= DROPOUT_P
    return keep.astype(jnp.float32) * (1.0 / (1.0 - DROPOUT_P))


@functools.partial(jax.jit, static_argnames=("training",))
def feed_forward(x, params, key, *, training=True):
    """x: [B, 3] float32 -> [B, 3] float32. `key` drives dropout (vary it per step)."""
    w1, b1, w2, b2 = params
    B, F = x.shape
    assert F == FEAT

    tile_b = min(MAX_TILE_B, _round_up(B, LANE))
    Bp = _round_up(B, tile_b)

    # Feature-major layout: batch on the 128-lane axis, 3 features on sublanes.
    # Padded batch columns are sliced off at the end (they carry bias-only garbage).
    xT = jnp.zeros((FEAT, Bp), jnp.float32).at[:, :B].set(x.astype(jnp.float32).T)
    if training:
        mask = _dropout_mask(key, (FEAT, Bp))
    else:
        mask = jnp.ones((FEAT, Bp), jnp.float32)

    out = pl.pallas_call(
        _ffn_kernel,
        out_shape=jax.ShapeDtypeStruct((FEAT, Bp), jnp.float32),
        grid=(Bp // tile_b,),
        in_specs=[
            pl.BlockSpec((FEAT, tile_b), lambda i: (0, i)),        # x (feature-major)
            pl.BlockSpec((FEAT, tile_b), lambda i: (0, i)),        # dropout keep-mask
            pl.BlockSpec(memory_space=pltpu.MemorySpace.SMEM),     # W1 [out, in]
            pl.BlockSpec(memory_space=pltpu.MemorySpace.SMEM),     # b1
            pl.BlockSpec(memory_space=pltpu.MemorySpace.SMEM),     # W2 [out, in]
            pl.BlockSpec(memory_space=pltpu.MemorySpace.SMEM),     # b2
        ],
        out_specs=pl.BlockSpec((FEAT, tile_b), lambda i: (0, i)),
        compiler_params=pltpu.CompilerParams(
            dimension_semantics=("parallel",),                     # batch tiles independent
        ),
    )(xT, mask, w1, b1, w2, b2)

    return out[:, :B].T


def _init_params(key):
    # Deterministic init mimicking torch.nn.Linear default: U(-1/sqrt(fan_in), 1/sqrt(fan_in)).
    k1, k2, k3, k4 = jax.random.split(key, 4)
    bound = 1.0 / jnp.sqrt(jnp.float32(FEAT))
    w1 = jax.random.uniform(k1, (FEAT, FEAT), jnp.float32, -bound, bound)
    b1 = jax.random.uniform(k2, (FEAT,), jnp.float32, -bound, bound)
    w2 = jax.random.uniform(k3, (FEAT, FEAT), jnp.float32, -bound, bound)
    b2 = jax.random.uniform(k4, (FEAT,), jnp.float32, -bound, bound)
    return w1, b1, w2, b2


def _reference(x, params, mask=None):
    # Pure-JAX reference: linear1 -> (optional masked dropout) -> linear2.
    w1, b1, w2, b2 = params
    h = x @ w1.T + b1
    if mask is not None:
        h = h * mask
    return h @ w2.T + b2


if __name__ == "__main__":
    key = jax.random.PRNGKey(0)
    pkey, xkey, dkey = jax.random.split(key, 3)
    params = _init_params(pkey)

    B = 8
    x = jax.random.normal(xkey, (B, FEAT), jnp.float32)

    # Eval mode (dropout = identity): exact match vs pure-JAX reference.
    y_eval = feed_forward(x, params, dkey, training=False)
    jax.block_until_ready(y_eval)
    assert y_eval.shape == (B, FEAT)
    assert jnp.allclose(y_eval, _reference(x, params), atol=1e-5, rtol=1e-5), "eval mismatch"

    # Training mode: mask is a pure function of the key, so the result is checkable exactly.
    # (Callers should vary `key` every training step for correct dropout statistics.)
    y_train = feed_forward(x, params, dkey, training=True)
    jax.block_until_ready(y_train)
    tile_b = min(MAX_TILE_B, _round_up(B, LANE))
    Bp = _round_up(B, tile_b)
    mask_bf = _dropout_mask(dkey, (FEAT, Bp))[:, :B].T      # [B, FEAT]
    assert jnp.allclose(y_train, _reference(x, params, mask=mask_bf),
                        atol=1e-5, rtol=1e-5), "train mismatch"

    print("KERNEL_OK")
</pallas_src>

<mosaic_0001>
module attributes {stable_mosaic.version = 11 : i64} {
  func.func @_ffn_kernel(%arg0: i32, %arg1: memref<3x128xf32, #tpu.memory_space<vmem>>, %arg2: memref<3x128xf32, #tpu.memory_space<vmem>>, %arg3: memref<3x3xf32, #tpu.memory_space<smem>>, %arg4: memref<3xf32, #tpu.memory_space<smem>>, %arg5: memref<3x3xf32, #tpu.memory_space<smem>>, %arg6: memref<3xf32, #tpu.memory_space<smem>>, %arg7: memref<3x128xf32, #tpu.memory_space<vmem>>) attributes {dimension_semantics = [#tpu.dimension_semantics<parallel>], iteration_bounds = array<i64: 1>, scalar_prefetch = 0 : i64, scratch_operands = 0 : i64, tpu.core_type = #tpu.core_type<tc>, window_params = [{transform_indices = @transform_0, window_bounds = array<i64: 3, 128>}, {transform_indices = @transform_1, window_bounds = array<i64: 3, 128>}, {transform_indices = @transform_2, window_bounds = array<i64: 3, 3>}, {transform_indices = @transform_3, window_bounds = array<i64: 3>}, {transform_indices = @transform_4, window_bounds = array<i64: 3, 3>}, {transform_indices = @transform_5, window_bounds = array<i64: 3>}, {transform_indices = @transform_6, window_bounds = array<i64: 3, 128>}]} {
    %c0 = arith.constant 0 : index
    %c0_0 = arith.constant 0 : index
    %0 = vector.load %arg1[%c0, %c0_0] : memref<3x128xf32, #tpu.memory_space<vmem>>, vector<1x128xf32>
    %c1 = arith.constant 1 : index
    %c0_1 = arith.constant 0 : index
    %1 = vector.load %arg1[%c1, %c0_1] : memref<3x128xf32, #tpu.memory_space<vmem>>, vector<1x128xf32>
    %c2 = arith.constant 2 : index
    %c0_2 = arith.constant 0 : index
    %2 = vector.load %arg1[%c2, %c0_2] : memref<3x128xf32, #tpu.memory_space<vmem>>, vector<1x128xf32>
    %c0_3 = arith.constant 0 : index
    %c0_4 = arith.constant 0 : index
    %3 = memref.load %arg3[%c0_3, %c0_4] : memref<3x3xf32, #tpu.memory_space<smem>>
    %4 = vector.broadcast %3 : f32 to vector<1x128xf32>
    %5 = arith.mulf %0, %4 : vector<1x128xf32>
    %c0_5 = arith.constant 0 : index
    %c1_6 = arith.constant 1 : index
    %6 = memref.load %arg3[%c0_5, %c1_6] : memref<3x3xf32, #tpu.memory_space<smem>>
    %7 = vector.broadcast %6 : f32 to vector<1x128xf32>
    %8 = arith.mulf %1, %7 : vector<1x128xf32>
    %9 = arith.addf %5, %8 : vector<1x128xf32>
    %c0_7 = arith.constant 0 : index
    %c2_8 = arith.constant 2 : index
    %10 = memref.load %arg3[%c0_7, %c2_8] : memref<3x3xf32, #tpu.memory_space<smem>>
    %11 = vector.broadcast %10 : f32 to vector<1x128xf32>
    %12 = arith.mulf %2, %11 : vector<1x128xf32>
    %13 = arith.addf %9, %12 : vector<1x128xf32>
    %c0_9 = arith.constant 0 : index
    %14 = memref.load %arg4[%c0_9] : memref<3xf32, #tpu.memory_space<smem>>
    %15 = vector.broadcast %14 : f32 to vector<1x128xf32>
    %16 = arith.addf %13, %15 : vector<1x128xf32>
    %c0_10 = arith.constant 0 : index
    %c0_11 = arith.constant 0 : index
    %17 = vector.load %arg2[%c0_10, %c0_11] : memref<3x128xf32, #tpu.memory_space<vmem>>, vector<1x128xf32>
    %18 = arith.mulf %16, %17 : vector<1x128xf32>
    %c1_12 = arith.constant 1 : index
    %c0_13 = arith.constant 0 : index
    %19 = memref.load %arg3[%c1_12, %c0_13] : memref<3x3xf32, #tpu.memory_space<smem>>
    %20 = vector.broadcast %19 : f32 to vector<1x128xf32>
    %21 = arith.mulf %0, %20 : vector<1x128xf32>
    %c1_14 = arith.constant 1 : index
    %c1_15 = arith.constant 1 : index
    %22 = memref.load %arg3[%c1_14, %c1_15] : memref<3x3xf32, #tpu.memory_space<smem>>
    %23 = vector.broadcast %22 : f32 to vector<1x128xf32>
    %24 = arith.mulf %1, %23 : vector<1x128xf32>
    %25 = arith.addf %21, %24 : vector<1x128xf32>
    %c1_16 = arith.constant 1 : index
    %c2_17 = arith.constant 2 : index
    %26 = memref.load %arg3[%c1_16, %c2_17] : memref<3x3xf32, #tpu.memory_space<smem>>
    %27 = vector.broadcast %26 : f32 to vector<1x128xf32>
    %28 = arith.mulf %2, %27 : vector<1x128xf32>
    %29 = arith.addf %25, %28 : vector<1x128xf32>
    %c1_18 = arith.constant 1 : index
    %30 = memref.load %arg4[%c1_18] : memref<3xf32, #tpu.memory_space<smem>>
    %31 = vector.broadcast %30 : f32 to vector<1x128xf32>
    %32 = arith.addf %29, %31 : vector<1x128xf32>
    %c1_19 = arith.constant 1 : index
    %c0_20 = arith.constant 0 : index
    %33 = vector.load %arg2[%c1_19, %c0_20] : memref<3x128xf32, #tpu.memory_space<vmem>>, vector<1x128xf32>
    %34 = arith.mulf %32, %33 : vector<1x128xf32>
    %c2_21 = arith.constant 2 : index
    %c0_22 = arith.constant 0 : index
    %35 = memref.load %arg3[%c2_21, %c0_22] : memref<3x3xf32, #tpu.memory_space<smem>>
    %36 = vector.broadcast %35 : f32 to vector<1x128xf32>
    %37 = arith.mulf %0, %36 : vector<1x128xf32>
    %c2_23 = arith.constant 2 : index
    %c1_24 = arith.constant 1 : index
    %38 = memref.load %arg3[%c2_23, %c1_24] : memref<3x3xf32, #tpu.memory_space<smem>>
    %39 = vector.broadcast %38 : f32 to vector<1x128xf32>
    %40 = arith.mulf %1, %39 : vector<1x128xf32>
    %41 = arith.addf %37, %40 : vector<1x128xf32>
    %c2_25 = arith.constant 2 : index
    %c2_26 = arith.constant 2 : index
    %42 = memref.load %arg3[%c2_25, %c2_26] : memref<3x3xf32, #tpu.memory_space<smem>>
    %43 = vector.broadcast %42 : f32 to vector<1x128xf32>
    %44 = arith.mulf %2, %43 : vector<1x128xf32>
    %45 = arith.addf %41, %44 : vector<1x128xf32>
    %c2_27 = arith.constant 2 : index
    %46 = memref.load %arg4[%c2_27] : memref<3xf32, #tpu.memory_space<smem>>
    %47 = vector.broadcast %46 : f32 to vector<1x128xf32>
    %48 = arith.addf %45, %47 : vector<1x128xf32>
    %c2_28 = arith.constant 2 : index
    %c0_29 = arith.constant 0 : index
    %49 = vector.load %arg2[%c2_28, %c0_29] : memref<3x128xf32, #tpu.memory_space<vmem>>, vector<1x128xf32>
    %50 = arith.mulf %48, %49 : vector<1x128xf32>
    %c0_30 = arith.constant 0 : index
    %c0_31 = arith.constant 0 : index
    %51 = memref.load %arg5[%c0_30, %c0_31] : memref<3x3xf32, #tpu.memory_space<smem>>
    %52 = vector.broadcast %51 : f32 to vector<1x128xf32>
    %53 = arith.mulf %18, %52 : vector<1x128xf32>
    %c0_32 = arith.constant 0 : index
    %c1_33 = arith.constant 1 : index
    %54 = memref.load %arg5[%c0_32, %c1_33] : memref<3x3xf32, #tpu.memory_space<smem>>
    %55 = vector.broadcast %54 : f32 to vector<1x128xf32>
    %56 = arith.mulf %34, %55 : vector<1x128xf32>
    %57 = arith.addf %53, %56 : vector<1x128xf32>
    %c0_34 = arith.constant 0 : index
    %c2_35 = arith.constant 2 : index
    %58 = memref.load %arg5[%c0_34, %c2_35] : memref<3x3xf32, #tpu.memory_space<smem>>
    %59 = vector.broadcast %58 : f32 to vector<1x128xf32>
    %60 = arith.mulf %50, %59 : vector<1x128xf32>
    %61 = arith.addf %57, %60 : vector<1x128xf32>
    %c0_36 = arith.constant 0 : index
    %62 = memref.load %arg6[%c0_36] : memref<3xf32, #tpu.memory_space<smem>>
    %63 = vector.broadcast %62 : f32 to vector<1x128xf32>
    %64 = arith.addf %61, %63 : vector<1x128xf32>
    %c0_37 = arith.constant 0 : index
    %c0_38 = arith.constant 0 : index
    %65 = vector.load %arg7[%c0_37, %c0_38] : memref<3x128xf32, #tpu.memory_space<vmem>>, vector<1x128xf32>
    tpu.vector_store %arg7[%c0_37, %c0_38], %64 {strides = array<i32>} : memref<3x128xf32, #tpu.memory_space<vmem>>, vector<1x128xf32>,
    %c1_39 = arith.constant 1 : index
    %c0_40 = arith.constant 0 : index
    %66 = memref.load %arg5[%c1_39, %c0_40] : memref<3x3xf32, #tpu.memory_space<smem>>
    %67 = vector.broadcast %66 : f32 to vector<1x128xf32>
    %68 = arith.mulf %18, %67 : vector<1x128xf32>
    %c1_41 = arith.constant 1 : index
    %c1_42 = arith.constant 1 : index
    %69 = memref.load %arg5[%c1_41, %c1_42] : memref<3x3xf32, #tpu.memory_space<smem>>
    %70 = vector.broadcast %69 : f32 to vector<1x128xf32>
    %71 = arith.mulf %34, %70 : vector<1x128xf32>
    %72 = arith.addf %68, %71 : vector<1x128xf32>
    %c1_43 = arith.constant 1 : index
    %c2_44 = arith.constant 2 : index
    %73 = memref.load %arg5[%c1_43, %c2_44] : memref<3x3xf32, #tpu.memory_space<smem>>
    %74 = vector.broadcast %73 : f32 to vector<1x128xf32>
    %75 = arith.mulf %50, %74 : vector<1x128xf32>
    %76 = arith.addf %72, %75 : vector<1x128xf32>
    %c1_45 = arith.constant 1 : index
    %77 = memref.load %arg6[%c1_45] : memref<3xf32, #tpu.memory_space<smem>>
    %78 = vector.broadcast %77 : f32 to vector<1x128xf32>
    %79 = arith.addf %76, %78 : vector<1x128xf32>
    %c1_46 = arith.constant 1 : index
    %c0_47 = arith.constant 0 : index
    %80 = vector.load %arg7[%c1_46, %c0_47] : memref<3x128xf32, #tpu.memory_space<vmem>>, vector<1x128xf32>
    tpu.vector_store %arg7[%c1_46, %c0_47], %79 {strides = array<i32>} : memref<3x128xf32, #tpu.memory_space<vmem>>, vector<1x128xf32>,
    %c2_48 = arith.constant 2 : index
    %c0_49 = arith.constant 0 : index
    %81 = memref.load %arg5[%c2_48, %c0_49] : memref<3x3xf32, #tpu.memory_space<smem>>
    %82 = vector.broadcast %81 : f32 to vector<1x128xf32>
    %83 = arith.mulf %18, %82 : vector<1x128xf32>
    %c2_50 = arith.constant 2 : index
    %c1_51 = arith.constant 1 : index
    %84 = memref.load %arg5[%c2_50, %c1_51] : memref<3x3xf32, #tpu.memory_space<smem>>
    %85 = vector.broadcast %84 : f32 to vector<1x128xf32>
    %86 = arith.mulf %34, %85 : vector<1x128xf32>
    %87 = arith.addf %83, %86 : vector<1x128xf32>
    %c2_52 = arith.constant 2 : index
    %c2_53 = arith.constant 2 : index
    %88 = memref.load %arg5[%c2_52, %c2_53] : memref<3x3xf32, #tpu.memory_space<smem>>
    %89 = vector.broadcast %88 : f32 to vector<1x128xf32>
    %90 = arith.mulf %50, %89 : vector<1x128xf32>
    %91 = arith.addf %87, %90 : vector<1x128xf32>
    %c2_54 = arith.constant 2 : index
    %92 = memref.load %arg6[%c2_54] : memref<3xf32, #tpu.memory_space<smem>>
    %93 = vector.broadcast %92 : f32 to vector<1x128xf32>
    %94 = arith.addf %91, %93 : vector<1x128xf32>
    %c2_55 = arith.constant 2 : index
    %c0_56 = arith.constant 0 : index
    %95 = vector.load %arg7[%c2_55, %c0_56] : memref<3x128xf32, #tpu.memory_space<vmem>>, vector<1x128xf32>
    tpu.vector_store %arg7[%c2_55, %c0_56], %94 {strides = array<i32>} : memref<3x128xf32, #tpu.memory_space<vmem>>, vector<1x128xf32>,
    return
  }
  func.func @transform_0(%arg0: i32) -> (i32, i32) {
    %c0_i32 = arith.constant 0 : i32
    %c0_i32_0 = arith.constant 0 : i32
    return %c0_i32, %arg0 : i32, i32
  }
  func.func @transform_1(%arg0: i32) -> (i32, i32) {
    %c0_i32 = arith.constant 0 : i32
    %c0_i32_0 = arith.constant 0 : i32
    return %c0_i32, %arg0 : i32, i32
  }
  func.func @transform_2(%arg0: i32) -> (i32, i32) {
    %c0_i32 = arith.constant 0 : i32
    %c0_i32_0 = arith.constant 0 : i32
    %c0_i32_1 = arith.constant 0 : i32
    return %c0_i32, %c0_i32_0 : i32, i32
  }
  func.func @transform_3(%arg0: i32) -> i32 {
    %c0_i32 = arith.constant 0 : i32
    %c0_i32_0 = arith.constant 0 : i32
    return %c0_i32 : i32
  }
  func.func @transform_4(%arg0: i32) -> (i32, i32) {
    %c0_i32 = arith.constant 0 : i32
    %c0_i32_0 = arith.constant 0 : i32
    %c0_i32_1 = arith.constant 0 : i32
    return %c0_i32, %c0_i32_0 : i32, i32
  }
  func.func @transform_5(%arg0: i32) -> i32 {
    %c0_i32 = arith.constant 0 : i32
    %c0_i32_0 = arith.constant 0 : i32
    return %c0_i32 : i32
  }
  func.func @transform_6(%arg0: i32) -> (i32, i32) {
    %c0_i32 = arith.constant 0 : i32
    %c0_i32_0 = arith.constant 0 : i32
    return %c0_i32, %arg0 : i32, i32
  }
}

</mosaic_0001>

<bundles_post_ra>
// kernel: feed_forward.1
= control target key start
LH: loop header
LB: loop body
LE: loop exit
PB: predicated region body
PF: predicated region fallthrough
CT: control target
= control target key end

     0   :  { %11 = vsyncpa [#allocation3], 0  ;;  %s384_s0 = inlined_call_operand.vmem [shape: f32[3,128], index: 0, kind: input, shape index: {}]   ;;  %s385_s1 = inlined_call_operand.vmem [shape: f32[3,128], index: 1, kind: input, shape index: {}]   ;;  %s386_s2 = inlined_call_operand.vmem [shape: f32[3,3], index: 2, kind: input, shape index: {}]   ;;  %s387_s3 = inlined_call_operand.vmem [shape: f32[3], index: 3, kind: input, shape index: {}]   ;;  %s388_s4 = inlined_call_operand.vmem [shape: f32[3,3], index: 4, kind: input, shape index: {}]   ;;  %s389_s5 = inlined_call_operand.vmem [shape: f32[3], index: 5, kind: input, shape index: {}]   ;;  %s390_s6 = inlined_call_operand.vmem [shape: f32[3,128], index: 6, kind: output, shape index: {}]  }
   0x1   :  { %12 = vsyncpa [#allocation5], 0  ;;  %s34_s23 = sshll.u32 %s387_s3, 4  ;;  %s35_s23 = int_to_ptr.vmem [resolvable:$true] %s34_s23 }
   0x2   :  { %13 = vsyncpa [#allocation8], 0  ;;  %s24_s26 = sshll.u32 %s386_s2, 4  ;;  %s198_s27 = scalar_lea.vmem %s35_s23, 16  ;;  %s25_s26 = int_to_ptr.vmem [resolvable:$true] %s24_s26 }
   0x3   :  { %p199_p0 = scmp.ne.s32.totalorder %s35_s23, %s198_s27  ;;  %p203_p1 = scmp.lt.s32.totalorder %s35_s23, %s35_s23 }
   0x4   :  { %p204_p2 = scmp.lt.s32.totalorder %s198_s27, %s198_s27 }
   0x6   :  { %p205_p3 = por %p204_p2, %p203_p1 }
   0x8   :  { %p206_p4 = pnand %p205_p3, %p199_p0 }
   0xa   :  { %209 = shalt.err (!%p206_p4)
}
   0xb   :  { %s252_s28 = smov [#allocation4]   ;;  %s210_s29 = scalar_lea.vmem %s25_s26, 64 }
   0xc   :  { %37 = dma.vmem_to_smem %s35_s23, 16, %s252_s28, [#allocation5]  }
   0xd   :  { %p211_p5 = scmp.ne.s32.totalorder %s25_s26, %s210_s29  ;;  %p215_p6 = scmp.lt.s32.totalorder %s25_s26, %s25_s26 }
   0xe   :  { %p216_p7 = scmp.lt.s32.totalorder %s210_s29, %s210_s29 }
  0x10   :  { %p217_p8 = por %p216_p7, %p215_p6 }
  0x12   :  { %p218_p9 = pnand %p217_p8, %p211_p5 }
  0x14   :  { %221 = shalt.err (!%p218_p9)
}
  0x15   :  { %s253_s3 = smov [#allocation2]   ;;  %s44_s7 = sshll.u32 %s388_s4, 4  ;;  %s45_s7 = int_to_ptr.vmem [resolvable:$true] %s44_s7 }
  0x16   :  { %27 = dma.vmem_to_smem %s25_s26, 64, %s253_s3, [#allocation3]  }
  0x17   :  { %s54_s10 = sshll.u32 %s389_s5, 4  ;;  %s222_s11 = scalar_lea.vmem %s45_s7, 64  ;;  %s55_s10 = int_to_ptr.vmem [resolvable:$true] %s54_s10 }
  0x18   :  { %p223_p10 = scmp.ne.s32.totalorder %s45_s7, %s222_s11  ;;  %p227_p11 = scmp.lt.s32.totalorder %s45_s7, %s45_s7 }
  0x19   :  { %p228_p12 = scmp.lt.s32.totalorder %s222_s11, %s222_s11 }
  0x1b   :  { %p229_p13 = por %p228_p12, %p227_p11 }
  0x1d   :  { %p230_p0 = pnand %p229_p13, %p223_p10 }
  0x1f   :  { %233 = shalt.err (!%p230_p0)
}
  0x20   :  { %s254_s12 = smov [#allocation6]   ;;  %s234_s13 = scalar_lea.vmem %s55_s10, 16 }
  0x21   :  { %47 = dma.vmem_to_smem %s45_s7, 64, %s254_s12, [#allocation5]  }
  0x22   :  { %p235_p1 = scmp.ne.s32.totalorder %s55_s10, %s234_s13  ;;  %p239_p2 = scmp.lt.s32.totalorder %s55_s10, %s55_s10 }
  0x23   :  { %p240_p3 = scmp.lt.s32.totalorder %s234_s13, %s234_s13 }
  0x25   :  { %p241_p4 = por %p240_p3, %p239_p2 }
  0x27   :  { %p242_p5 = pnand %p241_p4, %p235_p1 }
  0x29   :  { %245 = shalt.err (!%p242_p5)
}
  0x2a   :  { %s255_s4 = smov [#allocation7]  }
  0x2b   :  { %57 = dma.vmem_to_smem %s55_s10, 16, %s255_s4, [#allocation8]  }
  0x2c   :  { %246 = dma.done.wait [#allocation3], 64  }
  0x2d   :  { %247 = vsyncadd [#allocation3], 4294967232 }
  0x2e   :  { %248 = dma.done.wait [#allocation5], 80  }
  0x2f   :  { %249 = vsyncadd [#allocation5], 4294967216 }
  0x30   :  { %250 = dma.done.wait [#allocation8], 16  }
  0x31   :  { %251 = vsyncadd [#allocation8], 4294967280 }
  0x32   :  { %70 = sfence }
  0x33   :  { %s74_s5 = sld [smem:[#allocation2]]  ;;  %s174_s14 = sld [smem:[#allocation2 + $0x1]]  ;;  %v71_v0 = vld [vmem:[%s384_s0] sm:$0x1]  ;;  %v72_v1 = vld [vmem:[%s384_s0 + $0x1] sm:$0x1] }
  0x34   :  { %s175_s15 = sld [smem:[#allocation2 + $0x2]]  ;;  %s303_s16 = sld [smem:[#allocation4]]  ;;  %v73_v2 = vld [vmem:[%s384_s0 + $0x2] sm:$0x1]  ;;  %v88_v23 = vld [vmem:[%s385_s1] sm:$0x1] }
  0x35   :  { %s176_s17 = sld [smem:[#allocation2 + $0x80]]  ;;  %s177_s18 = sld [smem:[#allocation2 + $0x81]]  ;;  %v104_v30 = vld [vmem:[%s385_s1 + $0x1] sm:$0x1]  ;;  %v120_v37 = vld [vmem:[%s385_s1 + $0x2] sm:$0x1] }
  0x36   :  { %s178_s21 = sld [smem:[#allocation2 + $0x82]]  ;;  %s308_s22 = sld [smem:[#allocation4 + $0x1]] }
  0x37   :  { %s313_s25 = sld [smem:[#allocation2 + $0x100]]  ;;  %s315_s26 = sld [smem:[#allocation2 + $0x101]] }
  0x38   :  { %s320_s29 = sld [smem:[#allocation2 + $0x102]]  ;;  %s324_s2 = sld [smem:[#allocation6]] }
  0x39   :  { %v75_v3 = vstv %s74_s5  ;;  %v78_v4 = vstv %s174_s14  ;;  %s322_s3 = sld [smem:[#allocation4 + $0x2]]  ;;  %s326_s30 = sld [smem:[#allocation6 + $0x1]] }
  0x3a   :  { %v76_v5 = vmul.f32 %v75_v3, %v71_v0  ;;  %v79_v6 = vmul.f32 %v78_v4, %v72_v1  ;;  %v82_v7 = vstv %s175_s15  ;;  %s328_s0 = sld [smem:[#allocation6 + $0x80]]  ;;  %s330_s7 = sld [smem:[#allocation6 + $0x81]]  ;;  %v86_v15 = vstv %s303_s16 }
  0x3b   :  { %v83_v8 = vmul.f32 %v82_v7, %v73_v2  ;;  %v91_v9 = vstv %s176_s17  ;;  %v94_v10 = vstv %s177_s18  ;;  %s332_s8 = sld [smem:[#allocation6 + $0x2]]  ;;  %s339_s10 = sld [smem:[#allocation6 + $0x100]] }
  0x3c   :  { %v80_v11 = vadd.f32 %v79_v6, %v76_v5  ;;  %v92_v12 = vmul.f32 %v91_v9, %v71_v0  ;;  %v95_v13 = vmul.f32 %v94_v10, %v72_v1  ;;  %v98_v14 = vstv %s178_s21  ;;  %s334_s9 = sld [smem:[#allocation6 + $0x82]]  ;;  %s341_s11 = sld [smem:[#allocation6 + $0x101]] }
  0x3d   :  { %v99_v16 = vmul.f32 %v98_v14, %v73_v2  ;;  %v107_v17 = vstv %s313_s25  ;;  %v110_v18 = vstv %s315_s26  ;;  %s343_s12 = sld [smem:[#allocation6 + $0x102]]  ;;  %v102_v24 = vstv %s308_s22  ;;  %s355_s15 = sld [smem:[#allocation7]] }
  0x3e   :  { %v84_v19 = vadd.f32 %v83_v8, %v80_v11  ;;  %v96_v20 = vadd.f32 %v95_v13, %v92_v12  ;;  %v108_v21 = vmul.f32 %v107_v17, %v71_v0  ;;  %v111_v22 = vmul.f32 %v110_v18, %v72_v1  ;;  %s358_s16 = sld [smem:[#allocation7 + $0x1]]  ;;  %s363_s19 = sld [smem:[#allocation7 + $0x2]] }
  0x3f   :  { %v114_v25 = vstv %s320_s29  ;;  %v118_v31 = vstv %s322_s3  ;;  %v123_v32 = vstv %s324_s2  ;;  %v126_v38 = vstv %s326_s30 }
  0x40   :  { %v87_v26 = vadd.f32 %v86_v15, %v84_v19  ;;  %v100_v27 = vadd.f32 %v99_v16, %v96_v20  ;;  %v112_v28 = vadd.f32 %v111_v22, %v108_v21  ;;  %v115_v29 = vmul.f32 %v114_v25, %v73_v2 }
  0x41   :  { %v138_v33 = vstv %s328_s0  ;;  %v141_v39 = vstv %s330_s7  ;;  %v153_v40 = vstv %s339_s10  ;;  %v130_v46 = vstv %s332_s8 }
  0x42   :  { %v89_v34 = vmul.f32 %v88_v23, %v87_v26  ;;  %v103_v35 = vadd.f32 %v102_v24, %v100_v27  ;;  %v116_v36 = vadd.f32 %v115_v29, %v112_v28  ;;  %v156_v41 = vstv %s341_s11 }
  0x43   :  { %v145_v47 = vstv %s334_s9  ;;  %v160_v49 = vstv %s343_s12  ;;  %v134_v58 = vstv %s355_s15 }
  0x44   :  { %v105_v42 = vmul.f32 %v104_v30, %v103_v35  ;;  %v119_v43 = vadd.f32 %v118_v31, %v116_v36  ;;  %v124_v44 = vmul.f32 %v123_v32, %v89_v34  ;;  %v139_v45 = vmul.f32 %v138_v33, %v89_v34 }
  0x45   :  { %v154_v48 = vmul.f32 %v153_v40, %v89_v34  ;;  %v149_v59 = vstv %s358_s16  ;;  %v164_v0 = vstv %s363_s19 }
  0x46   :  { %v121_v50 = vmul.f32 %v120_v37, %v119_v43  ;;  %v127_v51 = vmul.f32 %v126_v38, %v105_v42  ;;  %v142_v52 = vmul.f32 %v141_v39, %v105_v42  ;;  %v157_v53 = vmul.f32 %v156_v41, %v105_v42 }
  0x48   :  { %v128_v54 = vadd.f32 %v127_v51, %v124_v44  ;;  %v131_v55 = vmul.f32 %v130_v46, %v121_v50  ;;  %v143_v56 = vadd.f32 %v142_v52, %v139_v45  ;;  %v146_v57 = vmul.f32 %v145_v47, %v121_v50 }
  0x49   :  { %v158_v60 = vadd.f32 %v157_v53, %v154_v48  ;;  %v161_v61 = vmul.f32 %v160_v49, %v121_v50 }
  0x4a   :  { %v132_v62 = vadd.f32 %v131_v55, %v128_v54  ;;  %v147_v63 = vadd.f32 %v146_v57, %v143_v56 }
  0x4b   :  { %v162_v1 = vadd.f32 %v161_v61, %v158_v60 }
  0x4c   :  { %v135_v2 = vadd.f32 %v134_v58, %v132_v62  ;;  %v150_v3 = vadd.f32 %v149_v59, %v147_v63 }
  0x4d   :  { %v165_v4 = vadd.f32 %v164_v0, %v162_v1 }
  0x4e   :  { %136 = vst [vmem:[%s390_s6] sm:$0x1] %v135_v2  ;;  %151 = vst [vmem:[%s390_s6 + $0x1] sm:$0x1] %v150_v3 }
  0x4f   :  { %166 = vst [vmem:[%s390_s6 + $0x2] sm:$0x1] %v165_v4 }
  0x50   :  { %171 = vsyncpa [#allocation3], 1 }
  0x51   :  { %172 = vsyncpa [#allocation5], 1 }
  0x52   :  { %173 = vsyncpa [#allocation8], 1 }

</bundles_post_ra>
